<compile_context>
chip_gen: v6e
topology: v6e:2x2x1
jax: 0.10.0
libtpu: 0.0.40
codegen_flags: <defaults>
</compile_context>

<pallas_src>
import jax
import jax.numpy as jnp
from jax.experimental import pallas as pl
from jax.experimental.pallas import tpu as pltpu


def _round_up(v, m):
    return (v + m - 1) // m * m


def linear_kernel(x_ref, w_ref, b_ref, o_ref):
    # Grid axis 0 iterates sequentially over K tiles (reduction axis).
    # o_ref (f32, resident across the whole grid) doubles as the accumulator.
    k = pl.program_id(0)

    @pl.when(k == 0)
    def _():
        # Fold the bias add into the accumulator init (broadcast over batch).
        o_ref[...] = jnp.broadcast_to(b_ref[...], o_ref.shape)

    o_ref[...] += jnp.dot(
        x_ref[...], w_ref[...], preferred_element_type=jnp.float32
    )


def _pick_tk(K, cap=8192):
    """Largest multiple of 128 <= cap that divides K (no padding needed);
    falls back to cap, in which case the wrapper zero-pads K."""
    cap = max(128, min((cap // 128) * 128, _round_up(K, 128)))
    t = cap
    while t >= 128:
        if K % t == 0:
            return t
        t -= 128
    return cap


def logistic_regression_forward(x, w_t, b, *, tk=None):
    """out = x @ w_t + b  (== nn.Linear(x) with weight = w_t.T, bias = b).

    x: (B, K), w_t: (K, N), b: (N,)  ->  (B, N) f32.
    Operands are streamed in their own dtype (store weights in bf16 outside
    this call for halved HBM traffic); accumulation is always f32.
    """
    B, K = x.shape
    K2, N = w_t.shape
    assert K == K2, (K, K2)
    assert b.shape == (N,), b.shape

    if tk is None:
        tk = _pick_tk(K)
    tk = max(128, (tk // 128) * 128)

    # Pad K with zeros (no effect on the dot) only if tk does not divide it.
    K_pad = _round_up(K, tk)
    x_s, w_s = x, w_t
    if K_pad != K:
        x_s = jnp.pad(x_s, ((0, 0), (0, K_pad - K)))
        w_s = jnp.pad(w_s, ((0, K_pad - K), (0, 0)))

    b2d = b.astype(jnp.float32).reshape(1, N)  # keep 2D for TPU layout

    num_k = K_pad // tk
    x_item = jnp.dtype(x_s.dtype).itemsize
    w_item = jnp.dtype(w_s.dtype).itemsize
    n_lanes = _round_up(N, 128)  # lane padding only inside VMEM
    b_sub = _round_up(B, 8)

    # VMEM footprint: double-buffered x / w_t tiles, resident f32 output + bias.
    vmem_bytes = (
        2 * tk * n_lanes * w_item        # W^T tiles (double buffered)
        + 2 * b_sub * tk * x_item        # x tiles (double buffered)
        + b_sub * n_lanes * 4            # resident f32 output/accumulator
        + 8 * n_lanes * 4                # bias
    )
    vmem_limit = int(min(max(vmem_bytes + (4 << 20), 16 << 20), 48 << 20))

    cost = pl.CostEstimate(
        flops=2 * B * K * N,
        transcendentals=0,
        bytes_accessed=int(K * N * w_item + B * K * x_item + B * N * 4 + N * 4),
    )

    return pl.pallas_call(
        linear_kernel,
        out_shape=jax.ShapeDtypeStruct((B, N), jnp.float32),
        grid_spec=pltpu.PrefetchScalarGridSpec(
            num_scalar_prefetch=0,
            grid=(num_k,),
            in_specs=[
                pl.BlockSpec((B, tk), lambda k: (0, k)),   # x tile (streamed)
                pl.BlockSpec((tk, N), lambda k: (k, 0)),   # W^T tile (streamed)
                pl.BlockSpec((1, N), lambda k: (0, 0)),    # bias (resident)
            ],
            out_specs=pl.BlockSpec((B, N), lambda k: (0, 0)),  # resident output
        ),
        compiler_params=pltpu.CompilerParams(
            dimension_semantics=("arbitrary",),  # K is a sequential reduction
            vmem_limit_bytes=vmem_limit,
        ),
        cost_estimate=cost,
    )(x_s, w_s, b2d)


if __name__ == "__main__":
    # Small, shape-consistent instantiation of LogisticRegression(input_size,
    # num_classes). (Original module uses input_size=4,320,000, num_classes=400;
    # the feature dim is scaled down here, num_classes kept at 400.)
    batch = 8
    input_size = 512
    num_classes = 400

    key = jax.random.PRNGKey(0)
    kx, kw, kb = jax.random.split(key, 3)

    x = jax.random.normal(kx, (batch, input_size), dtype=jnp.float32)
    # nn.Linear weight shape is (num_classes, input_size); store its transpose.
    w = jax.random.normal(kw, (num_classes, input_size), dtype=jnp.float32) * 0.02
    b = jax.random.normal(kb, (num_classes,), dtype=jnp.float32) * 0.02
    w_t = jnp.transpose(w)  # (input_size, num_classes)

    # 1) Exact-math path (f32 operands) against the f32 reference.
    out_f32 = jax.block_until_ready(logistic_regression_forward(x, w_t, b))
    ref_f32 = x @ w_t + b[None, :]
    assert out_f32.shape == (batch, num_classes)
    assert jnp.allclose(out_f32, ref_f32, atol=1e-3, rtol=1e-3)

    # 2) Production path: operands pre-converted to bf16 ONCE outside the call
    #    (halves the dominant HBM weight stream); accumulation stays f32.
    x_bf, w_bf = x.astype(jnp.bfloat16), w_t.astype(jnp.bfloat16)
    out_bf16 = jax.block_until_ready(logistic_regression_forward(x_bf, w_bf, b))
    ref_bf16 = (
        x_bf.astype(jnp.float32) @ w_bf.astype(jnp.float32) + b[None, :]
    )
    assert out_bf16.shape == (batch, num_classes)
    assert jnp.allclose(out_bf16, ref_bf16, atol=1e-2, rtol=1e-2)

    print("KERNEL_OK")
</pallas_src>

<mosaic_0001>
module attributes {stable_mosaic.version = 11 : i64} {
  func.func @linear_kernel(%arg0: i32, %arg1: memref<8x512xf32, #tpu.memory_space<vmem>>, %arg2: memref<512x400xf32, #tpu.memory_space<vmem>>, %arg3: memref<1x400xf32, #tpu.memory_space<vmem>>, %arg4: memref<8x400xf32, #tpu.memory_space<vmem>>) attributes {dimension_semantics = [#tpu.dimension_semantics<arbitrary>], iteration_bounds = array<i64: 1>, scalar_prefetch = 0 : i64, scratch_operands = 0 : i64, tpu.core_type = #tpu.core_type<tc>, window_params = [{transform_indices = @transform_0, window_bounds = array<i64: 8, 512>}, {transform_indices = @transform_1, window_bounds = array<i64: 512, 400>}, {pipeline_mode = #tpu.pipeline_mode<synchronous>, transform_indices = @transform_2, window_bounds = array<i64: 1, 400>}, {pipeline_mode = #tpu.pipeline_mode<synchronous>, transform_indices = @transform_3, window_bounds = array<i64: 8, 400>}]} {
    %c0_i32 = arith.constant 0 : i32
    %0 = arith.cmpi eq, %arg0, %c0_i32 : i32
    %1 = arith.extui %0 : i1 to i32
    %c0_i32_0 = arith.constant 0 : i32
    %2 = arith.cmpi ne, %1, %c0_i32_0 : i32
    scf.if %2 {
      %c0_8 = arith.constant 0 : index
      %c0_9 = arith.constant 0 : index
      %9 = vector.load %arg3[%c0_8, %c0_9] : memref<1x400xf32, #tpu.memory_space<vmem>>, vector<1x400xf32>
      %10 = vector.shape_cast %9 : vector<1x400xf32> to vector<1x400xf32>
      %11 = vector.broadcast %10 : vector<1x400xf32> to vector<8x400xf32>
      %c0_10 = arith.constant 0 : index
      %c0_11 = arith.constant 0 : index
      %12 = vector.load %arg4[%c0_10, %c0_11] : memref<8x400xf32, #tpu.memory_space<vmem>>, vector<8x400xf32>
      tpu.vector_store %arg4[%c0_10, %c0_11], %11 {strides = array<i32>} : memref<8x400xf32, #tpu.memory_space<vmem>>, vector<8x400xf32>,
    } else {
    }
    %c0 = arith.constant 0 : index
    %c0_1 = arith.constant 0 : index
    %3 = vector.load %arg4[%c0, %c0_1] : memref<8x400xf32, #tpu.memory_space<vmem>>, vector<8x400xf32>
    %c0_2 = arith.constant 0 : index
    %c0_3 = arith.constant 0 : index
    %4 = vector.load %arg1[%c0_2, %c0_3] : memref<8x512xf32, #tpu.memory_space<vmem>>, vector<8x512xf32>
    %c0_4 = arith.constant 0 : index
    %c0_5 = arith.constant 0 : index
    %5 = vector.load %arg2[%c0_4, %c0_5] : memref<512x400xf32, #tpu.memory_space<vmem>>, vector<512x400xf32>
    %cst = arith.constant dense<0.000000e+00> : vector<8x400xf32>
    %6 = tpu.matmul %4, %5, %cst {dimension_numbers = #tpu.dot_dimension_numbers<[1], [0], [0], [1], [0, 0, 1, 1], [], []>} : vector<8x512xf32>, vector<512x400xf32>, vector<8x400xf32> -> vector<8x400xf32>
    %7 = arith.addf %3, %6 : vector<8x400xf32>
    %c0_6 = arith.constant 0 : index
    %c0_7 = arith.constant 0 : index
    %8 = vector.load %arg4[%c0_6, %c0_7] : memref<8x400xf32, #tpu.memory_space<vmem>>, vector<8x400xf32>
    tpu.vector_store %arg4[%c0_6, %c0_7], %7 {strides = array<i32>} : memref<8x400xf32, #tpu.memory_space<vmem>>, vector<8x400xf32>,
    return
  }
  func.func @transform_0(%arg0: i32) -> (i32, i32) {
    %c0_i32 = arith.constant 0 : i32
    %c0_i32_0 = arith.constant 0 : i32
    return %c0_i32, %arg0 : i32, i32
  }
  func.func @transform_1(%arg0: i32) -> (i32, i32) {
    %c0_i32 = arith.constant 0 : i32
    %c0_i32_0 = arith.constant 0 : i32
    return %arg0, %c0_i32 : i32, i32
  }
  func.func @transform_2(%arg0: i32) -> (i32, i32) {
    %c0_i32 = arith.constant 0 : i32
    %c0_i32_0 = arith.constant 0 : i32
    %c0_i32_1 = arith.constant 0 : i32
    return %c0_i32, %c0_i32_0 : i32, i32
  }
  func.func @transform_3(%arg0: i32) -> (i32, i32) {
    %c0_i32 = arith.constant 0 : i32
    %c0_i32_0 = arith.constant 0 : i32
    %c0_i32_1 = arith.constant 0 : i32
    return %c0_i32, %c0_i32_0 : i32, i32
  }
}

</mosaic_0001>

<bundles_post_ra>
// kernel: tpu_custom_call.1
= control target key start
LH: loop header
LB: loop body
LE: loop exit
PB: predicated region body
PF: predicated region fallthrough
CT: control target
= control target key end

     0   :  { %s1465_s0 = inlined_call_operand.vmem [shape: f32[8,512], index: 0, kind: input, shape index: {}]   ;;  %s1466_s1 = inlined_call_operand.vmem [shape: f32[512,400], index: 1, kind: input, shape index: {}]   ;;  %s1467_s2 = inlined_call_operand.vmem [shape: f32[1,400], index: 2, kind: input, shape index: {}]   ;;  %s1468_s3 = inlined_call_operand.hbm [shape: f32[8,400], index: 3, kind: output, shape index: {}]  }
   0x1   :  { %v115_v0 = vld [vmem:[%s1466_s1 + $0x1e8] sm:$0xff]  ;;  %v114_v2 = vld [vmem:[%s1466_s1 + $0x1e0] sm:$0xff] }
   0x2   :  { %v243_v1 = vld [vmem:[%s1466_s1 + $0x5e8] sm:$0xff]  ;;  %310 = vmatprep.subr.mxu0 %v115_v0  ;;  %v242_v3 = vld [vmem:[%s1466_s1 + $0x5e0] sm:$0xff] }
   0x3   :  { %381 = vmatprep.subr.mxu1 %v243_v1  ;;  %v111_v4 = vld [vmem:[%s1466_s1 + $0x1c8] sm:$0xff]  ;;  %311 = vmatpush1.msra.mxu0 %v114_v2  ;;  %v110_v6 = vld [vmem:[%s1466_s1 + $0x1c0] sm:$0xff] }
   0x4   :  { %v239_v5 = vld [vmem:[%s1466_s1 + $0x5c8] sm:$0xff]  ;;  %382 = vmatpush1.msra.mxu1 %v242_v3  ;;  %v238_v7 = vld [vmem:[%s1466_s1 + $0x5c0] sm:$0xff]  ;;  %312 = vmatprep.subr.mxu0 %v111_v4 }
   0x5   :  { %v107_v8 = vld [vmem:[%s1466_s1 + $0x1a8] sm:$0xff]  ;;  %383 = vmatprep.subr.mxu1 %v239_v5  ;;  %v106_v10 = vld [vmem:[%s1466_s1 + $0x1a0] sm:$0xff]  ;;  %313 = vmatpush1.msra.mxu0 %v110_v6 }
   0x6   :  { %v235_v9 = vld [vmem:[%s1466_s1 + $0x5a8] sm:$0xff]  ;;  %v234_v11 = vld [vmem:[%s1466_s1 + $0x5a0] sm:$0xff]  ;;  %384 = vmatpush1.msra.mxu1 %v238_v7  ;;  %314 = vmatprep.subr.mxu0 %v107_v8 }
   0x7   :  { %v103_v12 = vld [vmem:[%s1466_s1 + $0x188] sm:$0xff]  ;;  %385 = vmatprep.subr.mxu1 %v235_v9  ;;  %v102_v14 = vld [vmem:[%s1466_s1 + $0x180] sm:$0xff]  ;;  %315 = vmatpush1.msra.mxu0 %v106_v10 }
   0x8   :  { %v231_v13 = vld [vmem:[%s1466_s1 + $0x588] sm:$0xff]  ;;  %v230_v15 = vld [vmem:[%s1466_s1 + $0x580] sm:$0xff]  ;;  %386 = vmatpush1.msra.mxu1 %v234_v11  ;;  %316 = vmatprep.subr.mxu0 %v103_v12 }
   0x9   :  { %v99_v16 = vld [vmem:[%s1466_s1 + $0x168] sm:$0xff]  ;;  %387 = vmatprep.subr.mxu1 %v231_v13  ;;  %v98_v18 = vld [vmem:[%s1466_s1 + $0x160] sm:$0xff]  ;;  %317 = vmatpush1.msra.mxu0 %v102_v14 }
   0xa   :  { %v227_v17 = vld [vmem:[%s1466_s1 + $0x568] sm:$0xff]  ;;  %v226_v19 = vld [vmem:[%s1466_s1 + $0x560] sm:$0xff]  ;;  %388 = vmatpush1.msra.mxu1 %v230_v15  ;;  %318 = vmatprep.subr.mxu0 %v99_v16 }
   0xb   :  { %v95_v20 = vld [vmem:[%s1466_s1 + $0x148] sm:$0xff]  ;;  %389 = vmatprep.subr.mxu1 %v227_v17  ;;  %v94_v22 = vld [vmem:[%s1466_s1 + $0x140] sm:$0xff]  ;;  %319 = vmatpush1.msra.mxu0 %v98_v18 }
   0xc   :  { %v223_v21 = vld [vmem:[%s1466_s1 + $0x548] sm:$0xff]  ;;  %v222_v23 = vld [vmem:[%s1466_s1 + $0x540] sm:$0xff]  ;;  %390 = vmatpush1.msra.mxu1 %v226_v19  ;;  %320 = vmatprep.subr.mxu0 %v95_v20 }
   0xd   :  { %v91_v24 = vld [vmem:[%s1466_s1 + $0x128] sm:$0xff]  ;;  %391 = vmatprep.subr.mxu1 %v223_v21  ;;  %v90_v26 = vld [vmem:[%s1466_s1 + $0x120] sm:$0xff]  ;;  %321 = vmatpush1.msra.mxu0 %v94_v22 }
   0xe   :  { %v219_v25 = vld [vmem:[%s1466_s1 + $0x528] sm:$0xff]  ;;  %v218_v27 = vld [vmem:[%s1466_s1 + $0x520] sm:$0xff]  ;;  %392 = vmatpush1.msra.mxu1 %v222_v23  ;;  %322 = vmatprep.subr.mxu0 %v91_v24 }
   0xf   :  { %v87_v28 = vld [vmem:[%s1466_s1 + $0x108] sm:$0xff]  ;;  %393 = vmatprep.subr.mxu1 %v219_v25  ;;  %v86_v30 = vld [vmem:[%s1466_s1 + $0x100] sm:$0xff]  ;;  %323 = vmatpush1.msra.mxu0 %v90_v26 }
  0x10   :  { %v215_v29 = vld [vmem:[%s1466_s1 + $0x508] sm:$0xff]  ;;  %v214_v31 = vld [vmem:[%s1466_s1 + $0x500] sm:$0xff]  ;;  %394 = vmatpush1.msra.mxu1 %v218_v27  ;;  %324 = vmatprep.subr.mxu0 %v87_v28 }
  0x11   :  { %v83_v32 = vld [vmem:[%s1466_s1 + $0xe8] sm:$0xff]  ;;  %395 = vmatprep.subr.mxu1 %v215_v29  ;;  %v82_v34 = vld [vmem:[%s1466_s1 + $0xe0] sm:$0xff]  ;;  %325 = vmatpush1.msra.mxu0 %v86_v30 }
  0x12   :  { %v211_v33 = vld [vmem:[%s1466_s1 + $0x4e8] sm:$0xff]  ;;  %v210_v35 = vld [vmem:[%s1466_s1 + $0x4e0] sm:$0xff]  ;;  %396 = vmatpush1.msra.mxu1 %v214_v31  ;;  %326 = vmatprep.subr.mxu0 %v83_v32 }
  0x13   :  { %v79_v36 = vld [vmem:[%s1466_s1 + $0xc8] sm:$0xff]  ;;  %397 = vmatprep.subr.mxu1 %v211_v33  ;;  %v78_v38 = vld [vmem:[%s1466_s1 + $0xc0] sm:$0xff]  ;;  %327 = vmatpush1.msra.mxu0 %v82_v34 }
  0x14   :  { %v207_v37 = vld [vmem:[%s1466_s1 + $0x4c8] sm:$0xff]  ;;  %v206_v39 = vld [vmem:[%s1466_s1 + $0x4c0] sm:$0xff]  ;;  %398 = vmatpush1.msra.mxu1 %v210_v35  ;;  %328 = vmatprep.subr.mxu0 %v79_v36 }
  0x15   :  { %v75_v40 = vld [vmem:[%s1466_s1 + $0xa8] sm:$0xff]  ;;  %399 = vmatprep.subr.mxu1 %v207_v37  ;;  %v74_v42 = vld [vmem:[%s1466_s1 + $0xa0] sm:$0xff]  ;;  %329 = vmatpush1.msra.mxu0 %v78_v38 }
  0x16   :  { %v203_v41 = vld [vmem:[%s1466_s1 + $0x4a8] sm:$0xff]  ;;  %v202_v43 = vld [vmem:[%s1466_s1 + $0x4a0] sm:$0xff]  ;;  %400 = vmatpush1.msra.mxu1 %v206_v39  ;;  %330 = vmatprep.subr.mxu0 %v75_v40 }
  0x17   :  { %v71_v44 = vld [vmem:[%s1466_s1 + $0x88] sm:$0xff]  ;;  %401 = vmatprep.subr.mxu1 %v203_v41  ;;  %v70_v46 = vld [vmem:[%s1466_s1 + $0x80] sm:$0xff]  ;;  %331 = vmatpush1.msra.mxu0 %v74_v42 }
  0x18   :  { %v199_v45 = vld [vmem:[%s1466_s1 + $0x488] sm:$0xff]  ;;  %v198_v47 = vld [vmem:[%s1466_s1 + $0x480] sm:$0xff]  ;;  %402 = vmatpush1.msra.mxu1 %v202_v43  ;;  %332 = vmatprep.subr.mxu0 %v71_v44 }
  0x19   :  { %v67_v48 = vld [vmem:[%s1466_s1 + $0x68] sm:$0xff]  ;;  %403 = vmatprep.subr.mxu1 %v199_v45  ;;  %v66_v50 = vld [vmem:[%s1466_s1 + $0x60] sm:$0xff]  ;;  %333 = vmatpush1.msra.mxu0 %v70_v46 }
  0x1a   :  { %v195_v49 = vld [vmem:[%s1466_s1 + $0x468] sm:$0xff]  ;;  %v194_v51 = vld [vmem:[%s1466_s1 + $0x460] sm:$0xff]  ;;  %404 = vmatpush1.msra.mxu1 %v198_v47  ;;  %334 = vmatprep.subr.mxu0 %v67_v48 }
  0x1b   :  { %v63_v52 = vld [vmem:[%s1466_s1 + $0x48] sm:$0xff]  ;;  %405 = vmatprep.subr.mxu1 %v195_v49  ;;  %v62_v54 = vld [vmem:[%s1466_s1 + $0x40] sm:$0xff]  ;;  %335 = vmatpush1.msra.mxu0 %v66_v50 }
  0x1c   :  { %v191_v53 = vld [vmem:[%s1466_s1 + $0x448] sm:$0xff]  ;;  %v190_v55 = vld [vmem:[%s1466_s1 + $0x440] sm:$0xff]  ;;  %406 = vmatpush1.msra.mxu1 %v194_v51  ;;  %336 = vmatprep.subr.mxu0 %v63_v52 }
  0x1d   :  { %v59_v56 = vld [vmem:[%s1466_s1 + $0x28] sm:$0xff]  ;;  %407 = vmatprep.subr.mxu1 %v191_v53  ;;  %v58_v58 = vld [vmem:[%s1466_s1 + $0x20] sm:$0xff]  ;;  %337 = vmatpush1.msra.mxu0 %v62_v54 }
  0x1e   :  { %v187_v57 = vld [vmem:[%s1466_s1 + $0x428] sm:$0xff]  ;;  %v186_v59 = vld [vmem:[%s1466_s1 + $0x420] sm:$0xff]  ;;  %408 = vmatpush1.msra.mxu1 %v190_v55  ;;  %338 = vmatprep.subr.mxu0 %v59_v56 }
  0x1f   :  { %v55_v60 = vld [vmem:[%s1466_s1 + $0x8] sm:$0xff]  ;;  %409 = vmatprep.subr.mxu1 %v187_v57  ;;  %v54_v62 = vld [vmem:[%s1466_s1] sm:$0xff]  ;;  %339 = vmatpush1.msra.mxu0 %v58_v58 }
  0x20   :  { %v183_v61 = vld [vmem:[%s1466_s1 + $0x408] sm:$0xff]  ;;  %v182_v63 = vld [vmem:[%s1466_s1 + $0x400] sm:$0xff]  ;;  %410 = vmatpush1.msra.mxu1 %v186_v59  ;;  %340 = vmatprep.subr.mxu0 %v55_v60 }
  0x21   :  { %v179_v0 = vld [vmem:[%s1466_s1 + $0x3e8] sm:$0xff]  ;;  %411 = vmatprep.subr.mxu1 %v183_v61  ;;  %v178_v2 = vld [vmem:[%s1466_s1 + $0x3e0] sm:$0xff]  ;;  %341 = vmatpush1.msra.mxu0 %v54_v62 }
  0x22   :  { %v307_v1 = vld [vmem:[%s1466_s1 + $0x7e8] sm:$0xff]  ;;  %v306_v3 = vld [vmem:[%s1466_s1 + $0x7e0] sm:$0xff]  ;;  %412 = vmatpush1.msra.mxu1 %v182_v63  ;;  %342 = vmatprep.subr.mxu0 %v179_v0 }
  0x23   :  { %v175_v4 = vld [vmem:[%s1466_s1 + $0x3c8] sm:$0xff]  ;;  %413 = vmatprep.subr.mxu1 %v307_v1  ;;  %v174_v6 = vld [vmem:[%s1466_s1 + $0x3c0] sm:$0xff]  ;;  %343 = vmatpush2.msra.mxu0 %v178_v2  ;;  %v1053_v1 = vld [vmem:[%s1465_s0 + $0x18] sm:$0xff] }
  0x24   :  { %v303_v5 = vld [vmem:[%s1466_s1 + $0x7c8] sm:$0xff]  ;;  %v302_v7 = vld [vmem:[%s1466_s1 + $0x7c0] sm:$0xff]  ;;  %414 = vmatpush2.msra.mxu1 %v306_v3  ;;  %344 = vmatprep.subr.mxu0 %v175_v4  ;;  %v1063_v3 = vld [vmem:[%s1465_s0 + $0x10] sm:$0xff] }
  0x25   :  { %v171_v8 = vld [vmem:[%s1466_s1 + $0x3a8] sm:$0xff]  ;;  %415 = vmatprep.subr.mxu1 %v303_v5  ;;  %v170_v10 = vld [vmem:[%s1466_s1 + $0x3a0] sm:$0xff]  ;;  %345 = vmatpush2.msra.mxu0 %v174_v6  ;;  %v117_v4 = vld [vmem:[%s1466_s1 + $0x1f8] sm:$0xff] }
  0x26   :  { %v299_v9 = vld [vmem:[%s1466_s1 + $0x7a8] sm:$0xff]  ;;  %v298_v11 = vld [vmem:[%s1466_s1 + $0x7a0] sm:$0xff]  ;;  %416 = vmatpush2.msra.mxu1 %v302_v7  ;;  %346 = vmatprep.subr.mxu0 %v171_v8  ;;  %v245_v5 = vld [vmem:[%s1466_s1 + $0x5f8] sm:$0xff] }
  0x27   :  { %v167_v12 = vld [vmem:[%s1466_s1 + $0x388] sm:$0xff]  ;;  %417 = vmatprep.subr.mxu1 %v299_v9  ;;  %v166_v14 = vld [vmem:[%s1466_s1 + $0x380] sm:$0xff]  ;;  %347 = vmatpush2.msra.mxu0 %v170_v10  ;;  %v116_v6 = vld [vmem:[%s1466_s1 + $0x1f0] sm:$0xff] }
  0x28   :  { %v295_v13 = vld [vmem:[%s1466_s1 + $0x788] sm:$0xff]  ;;  %v294_v15 = vld [vmem:[%s1466_s1 + $0x780] sm:$0xff]  ;;  %418 = vmatpush2.msra.mxu1 %v298_v11  ;;  %348 = vmatprep.subr.mxu0 %v167_v12  ;;  %v244_v7 = vld [vmem:[%s1466_s1 + $0x5f0] sm:$0xff] }
  0x29   :  { %v163_v16 = vld [vmem:[%s1466_s1 + $0x368] sm:$0xff]  ;;  %419 = vmatprep.subr.mxu1 %v295_v13  ;;  %v162_v18 = vld [vmem:[%s1466_s1 + $0x360] sm:$0xff]  ;;  %349 = vmatpush2.msra.mxu0 %v166_v14  ;;  %v113_v8 = vld [vmem:[%s1466_s1 + $0x1d8] sm:$0xff] }
  0x2a   :  { %v291_v17 = vld [vmem:[%s1466_s1 + $0x768] sm:$0xff]  ;;  %v290_v19 = vld [vmem:[%s1466_s1 + $0x760] sm:$0xff]  ;;  %420 = vmatpush2.msra.mxu1 %v294_v15  ;;  %350 = vmatprep.subr.mxu0 %v163_v16  ;;  %v241_v9 = vld [vmem:[%s1466_s1 + $0x5d8] sm:$0xff] }
  0x2b   :  { %v159_v20 = vld [vmem:[%s1466_s1 + $0x348] sm:$0xff]  ;;  %421 = vmatprep.subr.mxu1 %v291_v17  ;;  %v158_v22 = vld [vmem:[%s1466_s1 + $0x340] sm:$0xff]  ;;  %351 = vmatpush2.msra.mxu0 %v162_v18  ;;  %v112_v10 = vld [vmem:[%s1466_s1 + $0x1d0] sm:$0xff] }
  0x2c   :  { %v287_v21 = vld [vmem:[%s1466_s1 + $0x748] sm:$0xff]  ;;  %v286_v23 = vld [vmem:[%s1466_s1 + $0x740] sm:$0xff]  ;;  %422 = vmatpush2.msra.mxu1 %v290_v19  ;;  %352 = vmatprep.subr.mxu0 %v159_v20  ;;  %v240_v11 = vld [vmem:[%s1466_s1 + $0x5d0] sm:$0xff] }
  0x2d   :  { %v155_v24 = vld [vmem:[%s1466_s1 + $0x328] sm:$0xff]  ;;  %423 = vmatprep.subr.mxu1 %v287_v21  ;;  %v154_v26 = vld [vmem:[%s1466_s1 + $0x320] sm:$0xff]  ;;  %353 = vmatpush2.msra.mxu0 %v158_v22  ;;  %v109_v12 = vld [vmem:[%s1466_s1 + $0x1b8] sm:$0xff] }
  0x2e   :  { %v283_v25 = vld [vmem:[%s1466_s1 + $0x728] sm:$0xff]  ;;  %v282_v27 = vld [vmem:[%s1466_s1 + $0x720] sm:$0xff]  ;;  %424 = vmatpush2.msra.mxu1 %v286_v23  ;;  %354 = vmatprep.subr.mxu0 %v155_v24  ;;  %v237_v13 = vld [vmem:[%s1466_s1 + $0x5b8] sm:$0xff] }
  0x2f   :  { %v151_v28 = vld [vmem:[%s1466_s1 + $0x308] sm:$0xff]  ;;  %425 = vmatprep.subr.mxu1 %v283_v25  ;;  %v150_v30 = vld [vmem:[%s1466_s1 + $0x300] sm:$0xff]  ;;  %355 = vmatpush2.msra.mxu0 %v154_v26  ;;  %v108_v14 = vld [vmem:[%s1466_s1 + $0x1b0] sm:$0xff] }
  0x30   :  { %v279_v29 = vld [vmem:[%s1466_s1 + $0x708] sm:$0xff]  ;;  %v278_v31 = vld [vmem:[%s1466_s1 + $0x700] sm:$0xff]  ;;  %426 = vmatpush2.msra.mxu1 %v282_v27  ;;  %356 = vmatprep.subr.mxu0 %v151_v28  ;;  %v236_v15 = vld [vmem:[%s1466_s1 + $0x5b0] sm:$0xff] }
  0x31   :  { %v147_v32 = vld [vmem:[%s1466_s1 + $0x2e8] sm:$0xff]  ;;  %427 = vmatprep.subr.mxu1 %v279_v29  ;;  %v146_v34 = vld [vmem:[%s1466_s1 + $0x2e0] sm:$0xff]  ;;  %357 = vmatpush2.msra.mxu0 %v150_v30  ;;  %v105_v16 = vld [vmem:[%s1466_s1 + $0x198] sm:$0xff] }
  0x32   :  { %v275_v33 = vld [vmem:[%s1466_s1 + $0x6e8] sm:$0xff]  ;;  %v274_v35 = vld [vmem:[%s1466_s1 + $0x6e0] sm:$0xff]  ;;  %428 = vmatpush2.msra.mxu1 %v278_v31  ;;  %358 = vmatprep.subr.mxu0 %v147_v32  ;;  %v233_v17 = vld [vmem:[%s1466_s1 + $0x598] sm:$0xff] }
  0x33   :  { %v143_v36 = vld [vmem:[%s1466_s1 + $0x2c8] sm:$0xff]  ;;  %429 = vmatprep.subr.mxu1 %v275_v33  ;;  %v142_v38 = vld [vmem:[%s1466_s1 + $0x2c0] sm:$0xff]  ;;  %359 = vmatpush2.msra.mxu0 %v146_v34  ;;  %v104_v18 = vld [vmem:[%s1466_s1 + $0x190] sm:$0xff] }
  0x34   :  { %v271_v37 = vld [vmem:[%s1466_s1 + $0x6c8] sm:$0xff]  ;;  %v270_v39 = vld [vmem:[%s1466_s1 + $0x6c0] sm:$0xff]  ;;  %430 = vmatpush2.msra.mxu1 %v274_v35  ;;  %360 = vmatprep.subr.mxu0 %v143_v36  ;;  %v232_v19 = vld [vmem:[%s1466_s1 + $0x590] sm:$0xff] }
  0x35   :  { %v139_v40 = vld [vmem:[%s1466_s1 + $0x2a8] sm:$0xff]  ;;  %431 = vmatprep.subr.mxu1 %v271_v37  ;;  %v138_v42 = vld [vmem:[%s1466_s1 + $0x2a0] sm:$0xff]  ;;  %361 = vmatpush2.msra.mxu0 %v142_v38  ;;  %v101_v20 = vld [vmem:[%s1466_s1 + $0x178] sm:$0xff] }
  0x36   :  { %v267_v41 = vld [vmem:[%s1466_s1 + $0x6a8] sm:$0xff]  ;;  %v266_v43 = vld [vmem:[%s1466_s1 + $0x6a0] sm:$0xff]  ;;  %432 = vmatpush2.msra.mxu1 %v270_v39  ;;  %362 = vmatprep.subr.mxu0 %v139_v40  ;;  %v229_v21 = vld [vmem:[%s1466_s1 + $0x578] sm:$0xff] }
  0x37   :  { %v135_v44 = vld [vmem:[%s1466_s1 + $0x288] sm:$0xff]  ;;  %433 = vmatprep.subr.mxu1 %v267_v41  ;;  %v134_v46 = vld [vmem:[%s1466_s1 + $0x280] sm:$0xff]  ;;  %363 = vmatpush2.msra.mxu0 %v138_v42  ;;  %v100_v22 = vld [vmem:[%s1466_s1 + $0x170] sm:$0xff] }
  0x38   :  { %v263_v45 = vld [vmem:[%s1466_s1 + $0x688] sm:$0xff]  ;;  %v262_v47 = vld [vmem:[%s1466_s1 + $0x680] sm:$0xff]  ;;  %434 = vmatpush2.msra.mxu1 %v266_v43  ;;  %364 = vmatprep.subr.mxu0 %v135_v44  ;;  %v228_v23 = vld [vmem:[%s1466_s1 + $0x570] sm:$0xff] }
  0x39   :  { %v131_v48 = vld [vmem:[%s1466_s1 + $0x268] sm:$0xff]  ;;  %435 = vmatprep.subr.mxu1 %v263_v45  ;;  %v130_v50 = vld [vmem:[%s1466_s1 + $0x260] sm:$0xff]  ;;  %365 = vmatpush2.msra.mxu0 %v134_v46  ;;  %v97_v24 = vld [vmem:[%s1466_s1 + $0x158] sm:$0xff] }
  0x3a   :  { %v259_v49 = vld [vmem:[%s1466_s1 + $0x668] sm:$0xff]  ;;  %v258_v51 = vld [vmem:[%s1466_s1 + $0x660] sm:$0xff]  ;;  %436 = vmatpush2.msra.mxu1 %v262_v47  ;;  %366 = vmatprep.subr.mxu0 %v131_v48  ;;  %v225_v25 = vld [vmem:[%s1466_s1 + $0x558] sm:$0xff] }
  0x3b   :  { %v127_v52 = vld [vmem:[%s1466_s1 + $0x248] sm:$0xff]  ;;  %437 = vmatprep.subr.mxu1 %v259_v49  ;;  %v126_v54 = vld [vmem:[%s1466_s1 + $0x240] sm:$0xff]  ;;  %367 = vmatpush2.msra.mxu0 %v130_v50  ;;  %v96_v26 = vld [vmem:[%s1466_s1 + $0x150] sm:$0xff] }
  0x3c   :  { %v255_v53 = vld [vmem:[%s1466_s1 + $0x648] sm:$0xff]  ;;  %v254_v55 = vld [vmem:[%s1466_s1 + $0x640] sm:$0xff]  ;;  %438 = vmatpush2.msra.mxu1 %v258_v51  ;;  %368 = vmatprep.subr.mxu0 %v127_v52  ;;  %v224_v27 = vld [vmem:[%s1466_s1 + $0x550] sm:$0xff] }
  0x3d   :  { %v123_v56 = vld [vmem:[%s1466_s1 + $0x228] sm:$0xff]  ;;  %439 = vmatprep.subr.mxu1 %v255_v53  ;;  %v122_v58 = vld [vmem:[%s1466_s1 + $0x220] sm:$0xff]  ;;  %369 = vmatpush2.msra.mxu0 %v126_v54  ;;  %v93_v28 = vld [vmem:[%s1466_s1 + $0x138] sm:$0xff] }
  0x3e   :  { %v251_v57 = vld [vmem:[%s1466_s1 + $0x628] sm:$0xff]  ;;  %v250_v59 = vld [vmem:[%s1466_s1 + $0x620] sm:$0xff]  ;;  %440 = vmatpush2.msra.mxu1 %v254_v55  ;;  %370 = vmatprep.subr.mxu0 %v123_v56  ;;  %v221_v29 = vld [vmem:[%s1466_s1 + $0x538] sm:$0xff] }
  0x3f   :  { %v119_v60 = vld [vmem:[%s1466_s1 + $0x208] sm:$0xff]  ;;  %441 = vmatprep.subr.mxu1 %v251_v57  ;;  %v118_v62 = vld [vmem:[%s1466_s1 + $0x200] sm:$0xff]  ;;  %371 = vmatpush2.msra.mxu0 %v122_v58  ;;  %v92_v30 = vld [vmem:[%s1466_s1 + $0x130] sm:$0xff] }
  0x40   :  { %v247_v61 = vld [vmem:[%s1466_s1 + $0x608] sm:$0xff]  ;;  %442 = vmatpush2.msra.mxu1 %v250_v59  ;;  %v246_v0 = vld [vmem:[%s1466_s1 + $0x600] sm:$0xff]  ;;  %372 = vmatprep.subr.mxu0 %v119_v60  ;;  %v220_v31 = vld [vmem:[%s1466_s1 + $0x530] sm:$0xff] }
  0x41   :  { %v1045_v63 = vld [vmem:[%s1465_s0 + $0x8] sm:$0xff]  ;;  %443 = vmatprep.subr.mxu1 %v247_v61  ;;  %v1058_v2 = vld [vmem:[%s1465_s0] sm:$0xff]  ;;  %373 = vmatpush2.msra.mxu0 %v118_v62  ;;  %v89_v32 = vld [vmem:[%s1466_s1 + $0x118] sm:$0xff] }
  0x42   :  { %374 = vmatprep.mubr.f32.mxu0 %v1045_v63  ;;  %444 = vmatpush2.msra.mxu1 %v246_v0  ;;  %v217_v33 = vld [vmem:[%s1466_s1 + $0x518] sm:$0xff]  ;;  %v88_v34 = vld [vmem:[%s1466_s1 + $0x110] sm:$0xff] }
  0x43   :  { %445 = vmatprep.mubr.f32.mxu1 %v1053_v1  ;;  %375 = vmatmul.mubr.f32.vlgmr.msra.gmra.mxu0 %v1058_v2  ;;  %v216_v35 = vld [vmem:[%s1466_s1 + $0x510] sm:$0xff]  ;;  %v85_v36 = vld [vmem:[%s1466_s1 + $0xf8] sm:$0xff] }
  0x44   :  { %446 = vmatmul.mubr.f32.vlgmr.msra.gmra.mxu1 %v1063_v3  ;;  %452 = vmatprep.subr.mxu0 %v117_v4  ;;  %v213_v37 = vld [vmem:[%s1466_s1 + $0x4f8] sm:$0xff]  ;;  %v84_v38 = vld [vmem:[%s1466_s1 + $0xf0] sm:$0xff] }
  0x45   :  { %523 = vmatprep.subr.mxu1 %v245_v5  ;;  %453 = vmatpush1.msra.mxu0 %v116_v6  ;;  %v212_v39 = vld [vmem:[%s1466_s1 + $0x4f0] sm:$0xff]  ;;  %v81_v40 = vld [vmem:[%s1466_s1 + $0xd8] sm:$0xff] }
  0x46   :  { %524 = vmatpush1.msra.mxu1 %v244_v7  ;;  %454 = vmatprep.subr.mxu0 %v113_v8  ;;  %v209_v41 = vld [vmem:[%s1466_s1 + $0x4d8] sm:$0xff]  ;;  %v80_v42 = vld [vmem:[%s1466_s1 + $0xd0] sm:$0xff] }
  0x47   :  { %525 = vmatprep.subr.mxu1 %v241_v9  ;;  %455 = vmatpush1.msra.mxu0 %v112_v10  ;;  %v208_v43 = vld [vmem:[%s1466_s1 + $0x4d0] sm:$0xff]  ;;  %v77_v44 = vld [vmem:[%s1466_s1 + $0xb8] sm:$0xff] }
  0x48   :  { %526 = vmatpush1.msra.mxu1 %v240_v11  ;;  %456 = vmatprep.subr.mxu0 %v109_v12  ;;  %v205_v45 = vld [vmem:[%s1466_s1 + $0x4b8] sm:$0xff]  ;;  %v76_v46 = vld [vmem:[%s1466_s1 + $0xb0] sm:$0xff] }
  0x49   :  { %527 = vmatprep.subr.mxu1 %v237_v13  ;;  %457 = vmatpush1.msra.mxu0 %v108_v14  ;;  %v204_v47 = vld [vmem:[%s1466_s1 + $0x4b0] sm:$0xff]  ;;  %v73_v48 = vld [vmem:[%s1466_s1 + $0x98] sm:$0xff] }
  0x4a   :  { %528 = vmatpush1.msra.mxu1 %v236_v15  ;;  %458 = vmatprep.subr.mxu0 %v105_v16  ;;  %v201_v49 = vld [vmem:[%s1466_s1 + $0x498] sm:$0xff] }
  0x4b   :  { %529 = vmatprep.subr.mxu1 %v233_v17  ;;  %459 = vmatpush1.msra.mxu0 %v104_v18 }
  0x4c   :  { %530 = vmatpush1.msra.mxu1 %v232_v19  ;;  %460 = vmatprep.subr.mxu0 %v101_v20 }
  0x4d   :  { %531 = vmatprep.subr.mxu1 %v229_v21  ;;  %461 = vmatpush1.msra.mxu0 %v100_v22 }
  0x4e   :  { %532 = vmatpush1.msra.mxu1 %v228_v23  ;;  %462 = vmatprep.subr.mxu0 %v97_v24 }
  0x4f   :  { %533 = vmatprep.subr.mxu1 %v225_v25  ;;  %463 = vmatpush1.msra.mxu0 %v96_v26 }
  0x50   :  { %534 = vmatpush1.msra.mxu1 %v224_v27  ;;  %464 = vmatprep.subr.mxu0 %v93_v28 }
  0x51   :  { %535 = vmatprep.subr.mxu1 %v221_v29  ;;  %465 = vmatpush1.msra.mxu0 %v92_v30 }
  0x52   :  { %536 = vmatpush1.msra.mxu1 %v220_v31  ;;  %466 = vmatprep.subr.mxu0 %v89_v32 }
  0x53   :  { %537 = vmatprep.subr.mxu1 %v217_v33  ;;  %467 = vmatpush1.msra.mxu0 %v88_v34 }
  0x54   :  { %538 = vmatpush1.msra.mxu1 %v216_v35  ;;  %468 = vmatprep.subr.mxu0 %v85_v36 }
  0x55   :  { %539 = vmatprep.subr.mxu1 %v213_v37  ;;  %469 = vmatpush1.msra.mxu0 %v84_v38 }
  0x56   :  { %540 = vmatpush1.msra.mxu1 %v212_v39  ;;  %470 = vmatprep.subr.mxu0 %v81_v40 }
  0x57   :  { %541 = vmatprep.subr.mxu1 %v209_v41  ;;  %471 = vmatpush1.msra.mxu0 %v80_v42 }
  0x58   :  { %542 = vmatpush1.msra.mxu1 %v208_v43 }
  0x59   :  { %8 = vsyncpa [#allocation3], 0  ;;  %472 = vmatprep.subr.mxu0 %v77_v44  ;;  %543 = vmatprep.subr.mxu1 %v205_v45  ;;  %v72_v50 = vld [vmem:[%s1466_s1 + $0x90] sm:$0xff]  ;;  %v69_v52 = vld [vmem:[%s1466_s1 + $0x78] sm:$0xff]  ;;  %vm44_vm0 = vcmask 130048  }
  0x5a   :  { %v200_v51 = vld [vmem:[%s1466_s1 + $0x490] sm:$0xff]  ;;  %473 = vmatpush1.msra.mxu0 %v76_v46  ;;  %544 = vmatpush1.msra.mxu1 %v204_v47  ;;  %v197_v53 = vld [vmem:[%s1466_s1 + $0x478] sm:$0xff] }
  0x5b   :  { %474 = vmatprep.subr.mxu0 %v73_v48  ;;  %545 = vmatprep.subr.mxu1 %v201_v49  ;;  %v68_v54 = vld [vmem:[%s1466_s1 + $0x70] sm:$0xff]  ;;  %v65_v56 = vld [vmem:[%s1466_s1 + $0x58] sm:$0xff] }
  0x5c   :  { %v196_v55 = vld [vmem:[%s1466_s1 + $0x470] sm:$0xff]  ;;  %475 = vmatpush1.msra.mxu0 %v72_v50  ;;  %546 = vmatpush1.msra.mxu1 %v200_v51  ;;  %v193_v57 = vld [vmem:[%s1466_s1 + $0x458] sm:$0xff] }
  0x5d   :  { %476 = vmatprep.subr.mxu0 %v69_v52  ;;  %547 = vmatprep.subr.mxu1 %v197_v53  ;;  %v64_v58 = vld [vmem:[%s1466_s1 + $0x50] sm:$0xff]  ;;  %v61_v60 = vld [vmem:[%s1466_s1 + $0x38] sm:$0xff] }
  0x5e   :  { %v192_v59 = vld [vmem:[%s1466_s1 + $0x450] sm:$0xff]  ;;  %477 = vmatpush1.msra.mxu0 %v68_v54  ;;  %548 = vmatpush1.msra.mxu1 %v196_v55  ;;  %v189_v61 = vld [vmem:[%s1466_s1 + $0x438] sm:$0xff] }
  0x5f   :  { %478 = vmatprep.subr.mxu0 %v65_v56  ;;  %549 = vmatprep.subr.mxu1 %v193_v57  ;;  %v60_v62 = vld [vmem:[%s1466_s1 + $0x30] sm:$0xff]  ;;  %v57_v4 = vld [vmem:[%s1466_s1 + $0x18] sm:$0xff] }
  0x60   :  { %v188_v0 = vld [vmem:[%s1466_s1 + $0x430] sm:$0xff]  ;;  %479 = vmatpush1.msra.mxu0 %v64_v58  ;;  %550 = vmatpush1.msra.mxu1 %v192_v59  ;;  %v185_v5 = vld [vmem:[%s1466_s1 + $0x418] sm:$0xff] }
  0x61   :  { %480 = vmatprep.subr.mxu0 %v61_v60  ;;  %551 = vmatprep.subr.mxu1 %v189_v61  ;;  %v56_v6 = vld [vmem:[%s1466_s1 + $0x10] sm:$0xff]  ;;  %v181_v8 = vld [vmem:[%s1466_s1 + $0x3f8] sm:$0xff] }
  0x62   :  { %v184_v7 = vld [vmem:[%s1466_s1 + $0x410] sm:$0xff]  ;;  %481 = vmatpush1.msra.mxu0 %v60_v62  ;;  %552 = vmatpush1.msra.mxu1 %v188_v0  ;;  %v309_v9 = vld [vmem:[%s1466_s1 + $0x7f8] sm:$0xff] }
  0x63   :  { %482 = vmatprep.subr.mxu0 %v57_v4  ;;  %553 = vmatprep.subr.mxu1 %v185_v5  ;;  %v180_v10 = vld [vmem:[%s1466_s1 + $0x3f0] sm:$0xff]  ;;  %v177_v12 = vld [vmem:[%s1466_s1 + $0x3d8] sm:$0xff] }
  0x64   :  { %v308_v11 = vld [vmem:[%s1466_s1 + $0x7f0] sm:$0xff]  ;;  %483 = vmatpush1.msra.mxu0 %v56_v6  ;;  %554 = vmatpush1.msra.mxu1 %v184_v7  ;;  %v305_v13 = vld [vmem:[%s1466_s1 + $0x7d8] sm:$0xff] }
  0x65   :  { %484 = vmatprep.subr.mxu0 %v181_v8  ;;  %555 = vmatprep.subr.mxu1 %v309_v9  ;;  %v176_v14 = vld [vmem:[%s1466_s1 + $0x3d0] sm:$0xff]  ;;  %v173_v16 = vld [vmem:[%s1466_s1 + $0x3b8] sm:$0xff] }
  0x66   :  { %v304_v15 = vld [vmem:[%s1466_s1 + $0x7d0] sm:$0xff]  ;;  %485 = vmatpush2.msra.mxu0 %v180_v10  ;;  %556 = vmatpush2.msra.mxu1 %v308_v11  ;;  %v301_v17 = vld [vmem:[%s1466_s1 + $0x7b8] sm:$0xff] }
  0x67   :  { %486 = vmatprep.subr.mxu0 %v177_v12  ;;  %557 = vmatprep.subr.mxu1 %v305_v13  ;;  %v172_v18 = vld [vmem:[%s1466_s1 + $0x3b0] sm:$0xff]  ;;  %v169_v20 = vld [vmem:[%s1466_s1 + $0x398] sm:$0xff]  ;;  %v21_v12 = vlaneseq }
  0x68   :  { %v300_v19 = vld [vmem:[%s1466_s1 + $0x7b0] sm:$0xff]  ;;  %487 = vmatpush2.msra.mxu0 %v176_v14  ;;  %558 = vmatpush2.msra.mxu1 %v304_v15  ;;  %v297_v21 = vld [vmem:[%s1466_s1 + $0x798] sm:$0xff]  ;;  %v19_v14 = vld [vmem:[%s1467_s2] sm:$0xf] }
  0x69   :  { %488 = vmatprep.subr.mxu0 %v173_v16  ;;  %559 = vmatprep.subr.mxu1 %v301_v17  ;;  %v168_v22 = vld [vmem:[%s1466_s1 + $0x390] sm:$0xff]  ;;  %v165_v24 = vld [vmem:[%s1466_s1 + $0x378] sm:$0xff]  ;;  %v22_v13 = vshrl.u32 %v21_v12, 7 }
  0x6a   :  { %v296_v23 = vld [vmem:[%s1466_s1 + $0x790] sm:$0xff]  ;;  %489 = vmatpush2.msra.mxu0 %v172_v18  ;;  %560 = vmatpush2.msra.mxu1 %v300_v19  ;;  %v293_v25 = vld [vmem:[%s1466_s1 + $0x778] sm:$0xff] }
  0x6b   :  { %490 = vmatprep.subr.mxu0 %v169_v20  ;;  %561 = vmatprep.subr.mxu1 %v297_v21  ;;  %v164_v26 = vld [vmem:[%s1466_s1 + $0x370] sm:$0xff]  ;;  %v161_v28 = vld [vmem:[%s1466_s1 + $0x358] sm:$0xff]  ;;  %v23_v15 = vsub.s32 0, %v22_v13  ;;  %v27_v16 = vsub.s32 1, %v22_v13  ;;  %v35_v19 = vsub.s32 3, %v22_v13 }
  0x6c   :  { %v292_v27 = vld [vmem:[%s1466_s1 + $0x770] sm:$0xff]  ;;  %491 = vmatpush2.msra.mxu0 %v168_v22  ;;  %562 = vmatpush2.msra.mxu1 %v296_v23  ;;  %v289_v29 = vld [vmem:[%s1466_s1 + $0x758] sm:$0xff] }
  0x6d   :  { %492 = vmatprep.subr.mxu0 %v165_v24  ;;  %563 = vmatprep.subr.mxu1 %v293_v25  ;;  %v160_v30 = vld [vmem:[%s1466_s1 + $0x350] sm:$0xff]  ;;  %v157_v32 = vld [vmem:[%s1466_s1 + $0x338] sm:$0xff]  ;;  %v24_v17 = vrot.slane %v19_v14, %v23_v15  ;;  %v28_v18 = vrot.slane %v19_v14, %v27_v16  ;;  %v36_v20 = vrot.slane %v19_v14, %v35_v19 }
  0x6e   :  { %v288_v31 = vld [vmem:[%s1466_s1 + $0x750] sm:$0xff]  ;;  %493 = vmatpush2.msra.mxu0 %v164_v26  ;;  %564 = vmatpush2.msra.mxu1 %v292_v27  ;;  %v285_v33 = vld [vmem:[%s1466_s1 + $0x738] sm:$0xff] }
  0x6f   :  { %494 = vmatprep.subr.mxu0 %v161_v28  ;;  %565 = vmatprep.subr.mxu1 %v289_v29  ;;  %v156_v34 = vld [vmem:[%s1466_s1 + $0x330] sm:$0xff]  ;;  %v153_v36 = vld [vmem:[%s1466_s1 + $0x318] sm:$0xff]  ;;  %45 = vst.msk [vmem:[#allocation2 + $0x18] sm:$0xff] %vm44_vm0, %v36_v20 }
  0x70   :  { %v284_v35 = vld [vmem:[%s1466_s1 + $0x730] sm:$0xff]  ;;  %495 = vmatpush2.msra.mxu0 %v160_v30  ;;  %566 = vmatpush2.msra.mxu1 %v288_v31  ;;  %v281_v37 = vld [vmem:[%s1466_s1 + $0x718] sm:$0xff] }
  0x71   :  { %496 = vmatprep.subr.mxu0 %v157_v32  ;;  %567 = vmatprep.subr.mxu1 %v285_v33  ;;  %v152_v38 = vld [vmem:[%s1466_s1 + $0x310] sm:$0xff]  ;;  %v149_v40 = vld [vmem:[%s1466_s1 + $0x2f8] sm:$0xff] }
  0x72   :  { %v280_v39 = vld [vmem:[%s1466_s1 + $0x710] sm:$0xff]  ;;  %497 = vmatpush2.msra.mxu0 %v156_v34  ;;  %568 = vmatpush2.msra.mxu1 %v284_v35  ;;  %v277_v41 = vld [vmem:[%s1466_s1 + $0x6f8] sm:$0xff] }
  0x73   :  { %498 = vmatprep.subr.mxu0 %v153_v36  ;;  %569 = vmatprep.subr.mxu1 %v281_v37  ;;  %v148_v42 = vld [vmem:[%s1466_s1 + $0x2f0] sm:$0xff]  ;;  %v145_v44 = vld [vmem:[%s1466_s1 + $0x2d8] sm:$0xff] }
  0x74   :  { %v276_v43 = vld [vmem:[%s1466_s1 + $0x6f0] sm:$0xff]  ;;  %499 = vmatpush2.msra.mxu0 %v152_v38  ;;  %570 = vmatpush2.msra.mxu1 %v280_v39  ;;  %v273_v45 = vld [vmem:[%s1466_s1 + $0x6d8] sm:$0xff] }
  0x75   :  { %500 = vmatprep.subr.mxu0 %v149_v40  ;;  %571 = vmatprep.subr.mxu1 %v277_v41  ;;  %v144_v46 = vld [vmem:[%s1466_s1 + $0x2d0] sm:$0xff]  ;;  %v141_v48 = vld [vmem:[%s1466_s1 + $0x2b8] sm:$0xff] }
  0x76   :  { %v272_v47 = vld [vmem:[%s1466_s1 + $0x6d0] sm:$0xff]  ;;  %501 = vmatpush2.msra.mxu0 %v148_v42  ;;  %572 = vmatpush2.msra.mxu1 %v276_v43  ;;  %v269_v49 = vld [vmem:[%s1466_s1 + $0x6b8] sm:$0xff] }
  0x77   :  { %502 = vmatprep.subr.mxu0 %v145_v44  ;;  %573 = vmatprep.subr.mxu1 %v273_v45  ;;  %v140_v50 = vld [vmem:[%s1466_s1 + $0x2b0] sm:$0xff]  ;;  %v137_v52 = vld [vmem:[%s1466_s1 + $0x298] sm:$0xff] }
  0x78   :  { %v268_v51 = vld [vmem:[%s1466_s1 + $0x6b0] sm:$0xff]  ;;  %503 = vmatpush2.msra.mxu0 %v144_v46  ;;  %574 = vmatpush2.msra.mxu1 %v272_v47  ;;  %v265_v53 = vld [vmem:[%s1466_s1 + $0x698] sm:$0xff] }
  0x79   :  { %504 = vmatprep.subr.mxu0 %v141_v48  ;;  %575 = vmatprep.subr.mxu1 %v269_v49  ;;  %v136_v54 = vld [vmem:[%s1466_s1 + $0x290] sm:$0xff]  ;;  %v133_v56 = vld [vmem:[%s1466_s1 + $0x278] sm:$0xff] }
  0x7a   :  { %v264_v55 = vld [vmem:[%s1466_s1 + $0x690] sm:$0xff]  ;;  %505 = vmatpush2.msra.mxu0 %v140_v50  ;;  %576 = vmatpush2.msra.mxu1 %v268_v51  ;;  %v261_v57 = vld [vmem:[%s1466_s1 + $0x678] sm:$0xff] }
  0x7b   :  { %506 = vmatprep.subr.mxu0 %v137_v52  ;;  %577 = vmatprep.subr.mxu1 %v265_v53  ;;  %v132_v58 = vld [vmem:[%s1466_s1 + $0x270] sm:$0xff]  ;;  %v129_v60 = vld [vmem:[%s1466_s1 + $0x258] sm:$0xff] }
  0x7c   :  { %v260_v59 = vld [vmem:[%s1466_s1 + $0x670] sm:$0xff]  ;;  %507 = vmatpush2.msra.mxu0 %v136_v54  ;;  %578 = vmatpush2.msra.mxu1 %v264_v55  ;;  %v257_v61 = vld [vmem:[%s1466_s1 + $0x658] sm:$0xff] }
  0x7d   :  { %508 = vmatprep.subr.mxu0 %v133_v56  ;;  %579 = vmatprep.subr.mxu1 %v261_v57  ;;  %v128_v62 = vld [vmem:[%s1466_s1 + $0x250] sm:$0xff]  ;;  %v125_v4 = vld [vmem:[%s1466_s1 + $0x238] sm:$0xff] }
  0x7e   :  { %v256_v0 = vld [vmem:[%s1466_s1 + $0x650] sm:$0xff]  ;;  %509 = vmatpush2.msra.mxu0 %v132_v58  ;;  %580 = vmatpush2.msra.mxu1 %v260_v59  ;;  %v253_v5 = vld [vmem:[%s1466_s1 + $0x638] sm:$0xff] }
  0x7f   :  { %510 = vmatprep.subr.mxu0 %v129_v60  ;;  %581 = vmatprep.subr.mxu1 %v257_v61  ;;  %v124_v6 = vld [vmem:[%s1466_s1 + $0x230] sm:$0xff]  ;;  %v121_v8 = vld [vmem:[%s1466_s1 + $0x218] sm:$0xff] }
  0x80   :  { %v252_v7 = vld [vmem:[%s1466_s1 + $0x630] sm:$0xff]  ;;  %511 = vmatpush2.msra.mxu0 %v128_v62  ;;  %582 = vmatpush2.msra.mxu1 %v256_v0  ;;  %v249_v9 = vld [vmem:[%s1466_s1 + $0x618] sm:$0xff] }
  0x81   :  { %512 = vmatprep.subr.mxu0 %v125_v4  ;;  %583 = vmatprep.subr.mxu1 %v253_v5  ;;  %v120_v10 = vld [vmem:[%s1466_s1 + $0x210] sm:$0xff]  ;;  %v49_v31 = vld [vmem:[#allocation2 + $0x18] sm:$0xff] }
  0x82   :  { %513 = vmatpush2.msra.mxu0 %v124_v6  ;;  %584 = vmatpush2.msra.mxu1 %v252_v7  ;;  %v248_v11 = vld [vmem:[%s1466_s1 + $0x610] sm:$0xff]  ;;  %s640_s1 = smov [#allocation2]  }
  0x83   :  { %514 = vmatprep.subr.mxu0 %v121_v8  ;;  %585 = vmatprep.subr.mxu1 %v249_v9  ;;  %s609_s2 = sshll.u32 %s640_s1, 4  ;;  %s610_s2 = int_to_ptr.vmem [resolvable:$true] %s609_s2 }
  0x84   :  { %515 = vmatpush2.msra.mxu0 %v120_v10  ;;  %516 = vmatprep.mubr.f32.mxu0 %v1045_v63  ;;  %v31_v63 = vsub.s32 2, %v22_v13  ;;  %s618_s0 = scalar_lea.vmem %s610_s2, 512  ;;  %p623_p1 = scmp.lt.s32.totalorder %s610_s2, %s610_s2 }
  0x85   :  { %586 = vmatpush2.msra.mxu1 %v248_v11  ;;  %587 = vmatprep.mubr.f32.mxu1 %v1053_v1  ;;  %p619_p0 = scmp.ne.s32.totalorder %s610_s2, %s618_s0  ;;  %p624_p2 = scmp.lt.s32.totalorder %s618_s0, %s618_s0 }
  0x86   :  { %517 = vmatmul.mubr.f32.vlgmr.msra.gmra.mxu0 %v1058_v2  ;;  %588 = vmatmul.mubr.f32.vlgmr.msra.gmra.mxu1 %v1063_v3  ;;  %v32_v21 = vrot.slane %v19_v14, %v31_v63 }
  0x87   :  { %p625_p3 = por %p624_p2, %p623_p1 }
  0x89   :  { %p626_p4 = pnand %p625_p3, %p619_p0 }
 0x103   :  { %v376_v1 = vpop.f32.mrf.mxu0 }
 0x104   :  { %v447_v22 = vpop.f32.mrf.mxu1 }
 0x105   :  { %v448_v23 = vadd.f32 %v447_v22, %v376_v1  ;;  %v378_v24 = vpop.f32.mrf.mxu0 }
 0x106   :  { %v449_v25 = vpop.f32.mrf.mxu1 }
 0x107   :  { %v594_v26 = vadd.f32 %v448_v23, %v24_v17  ;;  %v450_v2 = vadd.f32 %v449_v25, %v378_v24 }
 0x109   :  { %598 = vst [vmem:[#allocation2] sm:$0xff] %v594_v26  ;;  %v595_v3 = vadd.f32 %v450_v2, %v28_v18 }
 0x10b   :  { %599 = vst [vmem:[#allocation2 + $0x8] sm:$0xff] %v595_v3 }
 0x146   :  { %v518_v27 = vpop.f32.mrf.mxu0  ;;  %v589_v28 = vpop.f32.mrf.mxu1 }
 0x147   :  { %v590_v29 = vadd.f32 %v589_v28, %v518_v27 }
 0x148   :  { %v520_v30 = vpop.f32.mrf.mxu0  ;;  %v591_v32 = vpop.f32.mrf.mxu1 }
 0x149   :  { %v596_v33 = vadd.f32 %v590_v29, %v32_v21  ;;  %v592_v34 = vadd.f32 %v591_v32, %v520_v30 }
 0x14b   :  { %600 = vst [vmem:[#allocation2 + $0x10] sm:$0xff] %v596_v33  ;;  %v597_v35 = vadd.f32 %v592_v34, %v49_v31 }
 0x14d   :  { %602 = vst.msk [vmem:[#allocation2 + $0x18] sm:$0xff] %vm44_vm0, %v597_v35 }
 0x14e   :  { %629 = shalt.err (!%p626_p4)
}
 0x14f   :  { %612 = dma.vmem_to_hbm [thread:$0]  %s610_s2, 512, %s1468_s3, [#allocation3]  }
 0x150   :  { %638 = dma.done.wait [#allocation3], 512  }
 0x151   :  { %639 = vsyncadd [#allocation3], 4294966784 }
 0x152   :  { %616 = vsyncpa [#allocation3], 1 }

</bundles_post_ra>
